<compile_context>
chip_gen: v7x
topology: tpu7x:2x2x1
jax: 0.10.0
libtpu: 0.0.40
codegen_flags: <defaults>
</compile_context>

<pallas_src>
import numpy as np
import jax
import jax.numpy as jnp
from jax import lax
from jax.experimental import pallas as pl
from jax.experimental.pallas import tpu as pltpu


# Finite stand-in for -inf: masked logits underflow to exactly 0 after softmax for any
# row with at least one unmasked entry (torch parity), and fully-masked rows yield a
# uniform row instead of NaN.
_NEG_FILL = -1e30


def _mha_kernel(nhead, d_k, scale, mask_mode, return_attn, approx_recip, mm_dtype):
    """mask_mode: 0 = no mask, 2 = shared (tq, L) mask block, 3 = per-batch (1, tq, L)."""

    def kernel(*refs):
        it = iter(refs)
        q_ref = next(it)
        k_ref = next(it)
        v_ref = next(it)
        mask_ref = next(it) if mask_mode else None
        wq_ref = next(it)
        wk_ref = next(it)
        wv_ref = next(it)
        bv_ref = next(it)
        out_ref = next(it)
        attn_ref = next(it) if return_attn else None
        kp_ref = next(it)
        vp_ref = next(it)

        qt = pl.program_id(1)

        # K / V projections: computed once per batch element (first query tile) and
        # kept resident in VMEM scratch (mm_dtype, bf16 by default) across all query
        # tiles of this batch.  Relies on the qt axis being sequential ("arbitrary").
        @pl.when(qt == 0)
        def _():
            kp = jnp.dot(k_ref[0].astype(mm_dtype), wk_ref[...].astype(mm_dtype),
                         preferred_element_type=jnp.float32)
            vp = (jnp.dot(v_ref[0].astype(mm_dtype), wv_ref[...].astype(mm_dtype),
                          preferred_element_type=jnp.float32)
                  + bv_ref[...])
            kp_ref[...] = kp.astype(kp_ref.dtype)
            vp_ref[...] = vp.astype(vp_ref.dtype)

        # Q projection for this query tile; 1/sqrt(d_k) folded in once, single cast to
        # the MXU dtype (casts hoisted out of the per-head loop).
        qp = jnp.dot(q_ref[0].astype(mm_dtype), wq_ref[...].astype(mm_dtype),
                     preferred_element_type=jnp.float32)
        qp = (qp * scale).astype(mm_dtype)          # (TQ, D)
        kp = kp_ref[...]                            # (L, D), already mm_dtype
        vp = vp_ref[...]                            # (L, D), already mm_dtype

        # Mask -> additive bias, computed once per grid step (not once per head).
        bias = None
        if mask_mode:
            mblk = mask_ref[...] if mask_mode == 2 else mask_ref[0]
            # Assumes a binary (0/1 or bool) mask, like torch masked_fill(mask == 0).
            bias = jnp.where(mblk == 0.0, jnp.float32(_NEG_FILL), jnp.float32(0.0))

        # Q @ K^T via dot_general contracting the last dims of both operands: no
        # materialized transpose of K.
        qk_dims = (((1,), (1,)), ((), ()))

        # TODO(synk): a flash-style path (never materializing the (TQ, L) scores) would
        # cut VPU/HBM work further when return_attn=False; batching heads into one
        # dot_general does not deepen the d_k contraction, so the statically-unrolled
        # per-head loop is kept.
        for h in range(nhead):
            lo, hi = h * d_k, (h + 1) * d_k
            s = lax.dot_general(qp[:, lo:hi], kp[:, lo:hi], qk_dims,
                                preferred_element_type=jnp.float32)      # (TQ, L)
            if bias is not None:
                s = s + bias

            # softmax over j (torch dim=2); math kept in f32 for stability.
            s = s - jnp.max(s, axis=-1, keepdims=True)
            e = jnp.exp(s)
            inv = pl.reciprocal(jnp.sum(e, axis=-1, keepdims=True), approx=approx_recip)
            a = e * inv

            if return_attn:
                attn_ref[0, h] = a.astype(attn_ref.dtype)                # lane-dense (TQ, L)

            av = jnp.dot(a.astype(mm_dtype), vp[:, lo:hi],
                         preferred_element_type=jnp.float32)             # (TQ, d_k)
            # Write each head directly into the VMEM-resident output block (keeps vreg
            # pressure flat vs. concatenating all head outputs); the HBM writeback is
            # still one lane-dense (TQ, D) DMA per grid step.
            out_ref[0, :, lo:hi] = av.astype(out_ref.dtype)

    return kernel


def multi_head_attention(q, k, v, wq_t, wk_t, wv_t, bv, *, nhead, mask=None,
                         q_tile=256, return_attn=True, attn_layout="bijh",
                         attn_dtype=jnp.float32, matmul_dtype=jnp.bfloat16,
                         approx_softmax_recip=True, vmem_limit_bytes=None):
    """Forward pass of cleandiffuser MultiHeadAttention (eval mode).

    q, k, v          : (B, L, D)
    wq_t, wk_t, wv_t : (D, D) pre-transposed Linear weights (y = x @ W.T)
    bv               : (1, D) bias of the V projection (Q/K projections have bias=False)
    mask             : optional (L, L) or (B, L, L); positions where mask == 0 get a
                       large negative bias before softmax (torch masked_fill semantics
                       for any row with >= 1 unmasked entry; fully-masked rows give a
                       uniform row instead of NaN).
    q_tile           : query tile size; VMEM per step is O(TQ*L), default 256 for MXU
                       M-fill on v6e/v7x (clamped to L).
    return_attn      : False skips the (B, H, L, L) attn materialization entirely and
                       returns only `out` (big HBM-traffic saving).
    attn_layout      : "bijh" (PyTorch parity, pays an extra HBM transpose of the
                       largest tensor) or "bhij" (kernel-native, no transpose).
    attn_dtype       : dtype of the returned attn (jnp.bfloat16 halves its HBM/VMEM).
    matmul_dtype     : MXU operand dtype (default bf16 with f32 accumulation; also the
                       dtype of the resident K/V projection scratch). Use jnp.float32
                       for strict parity tests.
    approx_softmax_recip : EUP approximate reciprocal for the softmax denominator
                       (rows then sum to 1 only to ~1e-3); disable for parity tests.
    """
    B, L, D = q.shape
    assert D % nhead == 0, "`d_model` must be divisible by `nhead`."
    d_k = D // nhead
    scale = 1.0 / float(np.sqrt(d_k))

    tq = min(q_tile, L)
    assert L % tq == 0, "L must be divisible by the query tile size"
    nqt = L // tq

    mm_dtype = jnp.dtype(matmul_dtype if matmul_dtype is not None else q.dtype)
    attn_dtype = jnp.dtype(attn_dtype)

    mask_mode = 0
    inputs = [q, k, v]
    in_specs = [
        pl.BlockSpec((1, tq, D), lambda b, t: (b, t, 0)),   # q  (per query tile)
        pl.BlockSpec((1, L, D), lambda b, t: (b, 0, 0)),    # k  (resident per batch)
        pl.BlockSpec((1, L, D), lambda b, t: (b, 0, 0)),    # v  (resident per batch)
    ]
    if mask is not None:
        # Never broadcast a shared (L, L) mask to (B, L, L) in HBM.
        m = jnp.asarray(mask).astype(jnp.float32)
        if m.ndim == 2:
            mask_mode = 2
            in_specs.append(pl.BlockSpec((tq, L), lambda b, t: (t, 0)))
        elif m.ndim == 3:
            mask_mode = 3
            in_specs.append(pl.BlockSpec((1, tq, L), lambda b, t: (b, t, 0)))
        else:
            raise ValueError("`mask` shape should be either (i, j) or (b, i, j)")
        inputs.append(m)

    # Weight / bias blocks never change index -> single-buffer them (saves VMEM).
    const_kw = dict(pipeline_mode=pl.Buffered(1))
    inputs += [wq_t, wk_t, wv_t, bv]
    in_specs += [
        pl.BlockSpec((D, D), lambda b, t: (0, 0), **const_kw),   # Wq^T
        pl.BlockSpec((D, D), lambda b, t: (0, 0), **const_kw),   # Wk^T
        pl.BlockSpec((D, D), lambda b, t: (0, 0), **const_kw),   # Wv^T
        pl.BlockSpec((1, D), lambda b, t: (0, 0), **const_kw),   # bv
    ]

    out_shapes = [jax.ShapeDtypeStruct((B, L, D), q.dtype)]
    out_specs = [pl.BlockSpec((1, tq, D), lambda b, t: (b, t, 0))]
    if return_attn:
        out_shapes.append(jax.ShapeDtypeStruct((B, nhead, L, L), attn_dtype))
        out_specs.append(pl.BlockSpec((1, nhead, tq, L), lambda b, t: (b, 0, t, 0)))

    # Explicit VMEM budget (double-buffered blocks + resident scratch) with headroom;
    # auto value is capped at 64 MiB (v7x physical ceiling) -- pass vmem_limit_bytes
    # explicitly for larger configs on v5e/v6e.
    isz = lambda dt: jnp.dtype(dt).itemsize
    est = (2 * tq * D * isz(q.dtype)                    # q blocks (double-buffered)
           + 2 * 2 * L * D * isz(k.dtype)               # k, v blocks (double-buffered)
           + 3 * D * D * isz(wq_t.dtype)                # weights (single-buffered)
           + D * isz(bv.dtype)
           + 2 * tq * D * isz(q.dtype)                  # out blocks
           + 2 * L * D * isz(mm_dtype))                 # kp / vp scratch (resident)
    if mask_mode:
        est += 2 * tq * L * 4
    if return_attn:
        est += 2 * nhead * tq * L * isz(attn_dtype)
    if vmem_limit_bytes is None:
        vmem_limit_bytes = min(max(int(est * 1.5) + (2 << 20), 32 << 20), 64 << 20)

    kernel = _mha_kernel(nhead, d_k, scale, mask_mode, return_attn,
                         approx_softmax_recip, mm_dtype)

    outs = pl.pallas_call(
        kernel,
        out_shape=tuple(out_shapes),
        grid_spec=pltpu.PrefetchScalarGridSpec(
            num_scalar_prefetch=0,
            grid=(B, nqt),
            in_specs=in_specs,
            out_specs=out_specs,
            scratch_shapes=[
                pltpu.VMEM((L, D), mm_dtype),   # K projection (resident per batch)
                pltpu.VMEM((L, D), mm_dtype),   # V projection (resident per batch)
            ],
        ),
        # TODO(synk): for B < num_cores (v7x small-batch inference) shard the query-tile
        # axis across TensorCores instead of the batch axis; the qt==0 residency trick
        # would then need the K/V projection hoisted into a separate tiny pallas_call.
        compiler_params=pltpu.CompilerParams(
            dimension_semantics=("parallel", "arbitrary"),
            vmem_limit_bytes=int(vmem_limit_bytes)),
    )(*inputs)

    if not return_attn:
        return outs[0]
    out, attn_bhij = outs
    if attn_layout == "bhij":
        return out, attn_bhij
    # PyTorch convention (b, i, j, h). This re-reads/re-writes the largest tensor in
    # HBM -- pass attn_layout="bhij" (or return_attn=False) when parity isn't consumed.
    return out, jnp.transpose(attn_bhij, (0, 2, 3, 1))


def _reference(q, k, v, wq_t, wk_t, wv_t, bv, nhead, mask=None):
    B, L, D = q.shape
    d_k = D // nhead
    scale = 1.0 / np.sqrt(d_k)
    qp = (q @ wq_t).reshape(B, L, nhead, d_k)
    kp = (k @ wk_t).reshape(B, L, nhead, d_k)
    vp = (v @ wv_t + bv[0]).reshape(B, L, nhead, d_k)
    scores = jnp.einsum('bihd,bjhd->bijh', qp, kp) * scale
    if mask is not None:
        m = jnp.asarray(mask)
        if m.ndim == 2:
            m = m[None]
        scores = jnp.where(m[..., None] == 0, -jnp.inf, scores)
    attn = jax.nn.softmax(scores, axis=2)
    out = jnp.einsum('bijh,bjhd->bihd', attn, vp).reshape(B, L, D)
    return out, attn


if __name__ == "__main__":
    B, L, D, NHEAD = 2, 8, 32, 4

    key = jax.random.PRNGKey(0)
    kq, kk, kv, kwq, kwk, kwv, kbv = jax.random.split(key, 7)

    q = jax.random.normal(kq, (B, L, D), dtype=jnp.float32)
    k = jax.random.normal(kk, (B, L, D), dtype=jnp.float32)
    v = jax.random.normal(kv, (B, L, D), dtype=jnp.float32)

    # Deterministic synthetic nn.Linear(D, D) parameters, stored pre-transposed.
    lim = 1.0 / np.sqrt(D)
    wq_t = jax.random.uniform(kwq, (D, D), minval=-lim, maxval=lim, dtype=jnp.float32)
    wk_t = jax.random.uniform(kwk, (D, D), minval=-lim, maxval=lim, dtype=jnp.float32)
    wv_t = jax.random.uniform(kwv, (D, D), minval=-lim, maxval=lim, dtype=jnp.float32)
    bv = jax.random.uniform(kbv, (1, D), minval=-lim, maxval=lim, dtype=jnp.float32)

    out_ref, attn_ref = _reference(q, k, v, wq_t, wk_t, wv_t, bv, NHEAD)

    # 1) f32 parity path (exact reciprocal, PyTorch attn layout): tight check.
    out, attn = multi_head_attention(q, k, v, wq_t, wk_t, wv_t, bv, nhead=NHEAD,
                                     matmul_dtype=jnp.float32,
                                     approx_softmax_recip=False)
    jax.block_until_ready((out, attn))
    assert out.shape == (B, L, D) and attn.shape == (B, L, L, NHEAD)
    np.testing.assert_allclose(np.asarray(out), np.asarray(out_ref), rtol=1e-5, atol=1e-5)
    np.testing.assert_allclose(np.asarray(attn), np.asarray(attn_ref), rtol=1e-5, atol=1e-5)

    # 2) default fast path: bf16 MXU operands + bf16 K/V scratch, approx reciprocal,
    #    kernel-native "bhij" attn layout, bf16 attn output.
    out2, attn2 = multi_head_attention(q, k, v, wq_t, wk_t, wv_t, bv, nhead=NHEAD,
                                       attn_layout="bhij", attn_dtype=jnp.bfloat16)
    jax.block_until_ready((out2, attn2))
    assert attn2.shape == (B, NHEAD, L, L) and attn2.dtype == jnp.bfloat16
    np.testing.assert_allclose(np.asarray(out2), np.asarray(out_ref),
                               rtol=5e-2, atol=5e-2)
    np.testing.assert_allclose(np.asarray(attn2.astype(jnp.float32)),
                               np.asarray(jnp.transpose(attn_ref, (0, 3, 1, 2))),
                               rtol=5e-2, atol=5e-2)

    # 3) masked path (causal mask, shared 2-D mask, no batch broadcast), f32 parity.
    mask = jnp.tril(jnp.ones((L, L), dtype=jnp.float32))
    out_m, attn_m = multi_head_attention(q, k, v, wq_t, wk_t, wv_t, bv, nhead=NHEAD,
                                         mask=mask, matmul_dtype=jnp.float32,
                                         approx_softmax_recip=False)
    jax.block_until_ready((out_m, attn_m))
    out_mref, attn_mref = _reference(q, k, v, wq_t, wk_t, wv_t, bv, NHEAD, mask=mask)
    np.testing.assert_allclose(np.asarray(out_m), np.asarray(out_mref), rtol=1e-5, atol=1e-5)
    np.testing.assert_allclose(np.asarray(attn_m), np.asarray(attn_mref), rtol=1e-5, atol=1e-5)

    # 4) no-attn fast path: skips the (B, H, L, L) HBM materialization entirely.
    out3 = multi_head_attention(q, k, v, wq_t, wk_t, wv_t, bv, nhead=NHEAD,
                                return_attn=False)
    out3 = jax.block_until_ready(out3)
    np.testing.assert_allclose(np.asarray(out3), np.asarray(out_ref), rtol=5e-2, atol=5e-2)

    # TODO(synk): training-mode dropout on attn is not implemented (eval / identity).
    print("KERNEL_OK")
</pallas_src>

<mosaic_0001>
module attributes {stable_mosaic.version = 11 : i64} {
  func.func @kernel(%arg0: i32, %arg1: i32, %arg2: memref<1x8x32xf32, #tpu.memory_space<vmem>>, %arg3: memref<1x8x32xf32, #tpu.memory_space<vmem>>, %arg4: memref<1x8x32xf32, #tpu.memory_space<vmem>>, %arg5: memref<32x32xf32, #tpu.memory_space<vmem>>, %arg6: memref<32x32xf32, #tpu.memory_space<vmem>>, %arg7: memref<32x32xf32, #tpu.memory_space<vmem>>, %arg8: memref<1x32xf32, #tpu.memory_space<vmem>>, %arg9: memref<1x8x32xf32, #tpu.memory_space<vmem>>, %arg10: memref<1x4x8x8xf32, #tpu.memory_space<vmem>>, %arg11: memref<8x32xf32, #tpu.memory_space<vmem>>, %arg12: memref<8x32xf32, #tpu.memory_space<vmem>>) attributes {dimension_semantics = [#tpu.dimension_semantics<parallel>, #tpu.dimension_semantics<arbitrary>], iteration_bounds = array<i64: 2, 1>, scalar_prefetch = 0 : i64, scratch_operands = 2 : i64, tpu.core_type = #tpu.core_type<tc>, window_params = [{transform_indices = @transform_0, window_bounds = array<i64: 1, 8, 32>}, {transform_indices = @transform_1, window_bounds = array<i64: 1, 8, 32>}, {transform_indices = @transform_2, window_bounds = array<i64: 1, 8, 32>}, {pipeline_mode = #tpu.pipeline_mode<synchronous>, transform_indices = @transform_3, window_bounds = array<i64: 32, 32>}, {pipeline_mode = #tpu.pipeline_mode<synchronous>, transform_indices = @transform_4, window_bounds = array<i64: 32, 32>}, {pipeline_mode = #tpu.pipeline_mode<synchronous>, transform_indices = @transform_5, window_bounds = array<i64: 32, 32>}, {pipeline_mode = #tpu.pipeline_mode<synchronous>, transform_indices = @transform_6, window_bounds = array<i64: 1, 32>}, {transform_indices = @transform_7, window_bounds = array<i64: 1, 8, 32>}, {transform_indices = @transform_8, window_bounds = array<i64: 1, 4, 8, 8>}]} {
    %c0_i32 = arith.constant 0 : i32
    %0 = arith.cmpi eq, %arg1, %c0_i32 : i32
    %1 = arith.extui %0 : i1 to i32
    %c0_i32_0 = arith.constant 0 : i32
    %2 = arith.cmpi ne, %1, %c0_i32_0 : i32
    scf.if %2 {
      %c0_48 = arith.constant 0 : index
      %c0_49 = arith.constant 0 : index
      %c0_50 = arith.constant 0 : index
      %95 = vector.load %arg3[%c0_48, %c0_49, %c0_50] : memref<1x8x32xf32, #tpu.memory_space<vmem>>, vector<1x8x32xf32>
      %96 = vector.shape_cast %95 : vector<1x8x32xf32> to vector<8x32xf32>
      %c0_51 = arith.constant 0 : index
      %c0_52 = arith.constant 0 : index
      %97 = vector.load %arg6[%c0_51, %c0_52] : memref<32x32xf32, #tpu.memory_space<vmem>>, vector<32x32xf32>
      %cst_53 = arith.constant dense<0.000000e+00> : vector<8x32xf32>
      %98 = tpu.matmul %96, %97, %cst_53 {dimension_numbers = #tpu.dot_dimension_numbers<[1], [0], [0], [1], [0, 0, 1, 1], [], []>} : vector<8x32xf32>, vector<32x32xf32>, vector<8x32xf32> -> vector<8x32xf32>
      %c0_54 = arith.constant 0 : index
      %c0_55 = arith.constant 0 : index
      %c0_56 = arith.constant 0 : index
      %99 = vector.load %arg4[%c0_54, %c0_55, %c0_56] : memref<1x8x32xf32, #tpu.memory_space<vmem>>, vector<1x8x32xf32>
      %100 = vector.shape_cast %99 : vector<1x8x32xf32> to vector<8x32xf32>
      %c0_57 = arith.constant 0 : index
      %c0_58 = arith.constant 0 : index
      %101 = vector.load %arg7[%c0_57, %c0_58] : memref<32x32xf32, #tpu.memory_space<vmem>>, vector<32x32xf32>
      %cst_59 = arith.constant dense<0.000000e+00> : vector<8x32xf32>
      %102 = tpu.matmul %100, %101, %cst_59 {dimension_numbers = #tpu.dot_dimension_numbers<[1], [0], [0], [1], [0, 0, 1, 1], [], []>} : vector<8x32xf32>, vector<32x32xf32>, vector<8x32xf32> -> vector<8x32xf32>
      %c0_60 = arith.constant 0 : index
      %c0_61 = arith.constant 0 : index
      %103 = vector.load %arg8[%c0_60, %c0_61] : memref<1x32xf32, #tpu.memory_space<vmem>>, vector<1x32xf32>
      %104 = vector.broadcast %103 : vector<1x32xf32> to vector<8x32xf32>
      %105 = arith.addf %102, %104 : vector<8x32xf32>
      %c0_62 = arith.constant 0 : index
      %c0_63 = arith.constant 0 : index
      %106 = vector.load %arg11[%c0_62, %c0_63] : memref<8x32xf32, #tpu.memory_space<vmem>>, vector<8x32xf32>
      tpu.vector_store %arg11[%c0_62, %c0_63], %98 {strides = array<i32>} : memref<8x32xf32, #tpu.memory_space<vmem>>, vector<8x32xf32>,
      %c0_64 = arith.constant 0 : index
      %c0_65 = arith.constant 0 : index
      %107 = vector.load %arg12[%c0_64, %c0_65] : memref<8x32xf32, #tpu.memory_space<vmem>>, vector<8x32xf32>
      tpu.vector_store %arg12[%c0_64, %c0_65], %105 {strides = array<i32>} : memref<8x32xf32, #tpu.memory_space<vmem>>, vector<8x32xf32>,
    } else {
    }
    %c0 = arith.constant 0 : index
    %c0_1 = arith.constant 0 : index
    %c0_2 = arith.constant 0 : index
    %3 = vector.load %arg2[%c0, %c0_1, %c0_2] : memref<1x8x32xf32, #tpu.memory_space<vmem>>, vector<1x8x32xf32>
    %4 = vector.shape_cast %3 : vector<1x8x32xf32> to vector<8x32xf32>
    %c0_3 = arith.constant 0 : index
    %c0_4 = arith.constant 0 : index
    %5 = vector.load %arg5[%c0_3, %c0_4] : memref<32x32xf32, #tpu.memory_space<vmem>>, vector<32x32xf32>
    %cst = arith.constant dense<0.000000e+00> : vector<8x32xf32>
    %6 = tpu.matmul %4, %5, %cst {dimension_numbers = #tpu.dot_dimension_numbers<[1], [0], [0], [1], [0, 0, 1, 1], [], []>} : vector<8x32xf32>, vector<32x32xf32>, vector<8x32xf32> -> vector<8x32xf32>
    %cst_5 = arith.constant 0.353553385 : f32
    %7 = vector.broadcast %cst_5 : f32 to vector<8x32xf32>
    %8 = arith.mulf %6, %7 : vector<8x32xf32>
    %c0_6 = arith.constant 0 : index
    %c0_7 = arith.constant 0 : index
    %9 = vector.load %arg11[%c0_6, %c0_7] : memref<8x32xf32, #tpu.memory_space<vmem>>, vector<8x32xf32>
    %c0_8 = arith.constant 0 : index
    %c0_9 = arith.constant 0 : index
    %10 = vector.load %arg12[%c0_8, %c0_9] : memref<8x32xf32, #tpu.memory_space<vmem>>, vector<8x32xf32>
    %11 = vector.extract_strided_slice %8 {offsets = [0, 0], sizes = [8, 8], strides = [1, 1]} : vector<8x32xf32> to vector<8x8xf32>
    %12 = vector.extract_strided_slice %9 {offsets = [0, 0], sizes = [8, 8], strides = [1, 1]} : vector<8x32xf32> to vector<8x8xf32>
    %cst_10 = arith.constant dense<0.000000e+00> : vector<8x8xf32>
    %13 = tpu.matmul %11, %12, %cst_10 {dimension_numbers = #tpu.dot_dimension_numbers<[1], [1], [0], [0], [0, 0, 1, 0], [], []>} : vector<8x8xf32>, vector<8x8xf32>, vector<8x8xf32> -> vector<8x8xf32>
    %cst_11 = arith.constant dense<0xFF800000> : vector<8xf32>
    %14 = vector.multi_reduction <maximumf>, %13, %cst_11 [1] : vector<8x8xf32> to vector<8xf32>
    %15 = vector.shape_cast %14 : vector<8xf32> to vector<8x1xf32>
    %16 = vector.broadcast %15 : vector<8x1xf32> to vector<8x8xf32>
    %17 = arith.subf %13, %16 : vector<8x8xf32>
    %18 = math.exp %17 : vector<8x8xf32>
    %cst_12 = arith.constant dense<0.000000e+00> : vector<8xf32>
    %19 = vector.multi_reduction <add>, %18, %cst_12 [1] : vector<8x8xf32> to vector<8xf32>
    %20 = vector.shape_cast %19 : vector<8xf32> to vector<8x1xf32>
    %21 = tpu.reciprocal %20 : vector<8x1xf32> -> vector<8x1xf32>
    %22 = vector.broadcast %21 : vector<8x1xf32> to vector<8x8xf32>
    %23 = arith.mulf %18, %22 : vector<8x8xf32>
    %c0_13 = arith.constant 0 : index
    %c0_14 = arith.constant 0 : index
    %c0_15 = arith.constant 0 : index
    %c0_16 = arith.constant 0 : index
    %24 = vector.load %arg10[%c0_13, %c0_14, %c0_15, %c0_16] : memref<1x4x8x8xf32, #tpu.memory_space<vmem>>, vector<1x1x8x8xf32>
    %25 = vector.shape_cast %24 : vector<1x1x8x8xf32> to vector<8x8xf32>
    %26 = vector.shape_cast %23 : vector<8x8xf32> to vector<1x1x8x8xf32>
    tpu.vector_store %arg10[%c0_13, %c0_14, %c0_15, %c0_16], %26 {strides = array<i32>} : memref<1x4x8x8xf32, #tpu.memory_space<vmem>>, vector<1x1x8x8xf32>,
    %27 = vector.extract_strided_slice %10 {offsets = [0, 0], sizes = [8, 8], strides = [1, 1]} : vector<8x32xf32> to vector<8x8xf32>
    %cst_17 = arith.constant dense<0.000000e+00> : vector<8x8xf32>
    %28 = tpu.matmul %23, %27, %cst_17 {dimension_numbers = #tpu.dot_dimension_numbers<[1], [0], [0], [1], [0, 0, 1, 1], [], []>} : vector<8x8xf32>, vector<8x8xf32>, vector<8x8xf32> -> vector<8x8xf32>
    %c0_18 = arith.constant 0 : index
    %c0_19 = arith.constant 0 : index
    %c0_20 = arith.constant 0 : index
    %29 = vector.load %arg9[%c0_18, %c0_19, %c0_20] : memref<1x8x32xf32, #tpu.memory_space<vmem>>, vector<1x8x8xf32>
    %30 = vector.shape_cast %29 : vector<1x8x8xf32> to vector<8x8xf32>
    %31 = vector.shape_cast %28 : vector<8x8xf32> to vector<1x8x8xf32>
    tpu.vector_store %arg9[%c0_18, %c0_19, %c0_20], %31 {strides = array<i32>} : memref<1x8x32xf32, #tpu.memory_space<vmem>>, vector<1x8x8xf32>,
    %32 = vector.extract_strided_slice %8 {offsets = [0, 8], sizes = [8, 8], strides = [1, 1]} : vector<8x32xf32> to vector<8x8xf32>
    %33 = vector.extract_strided_slice %9 {offsets = [0, 8], sizes = [8, 8], strides = [1, 1]} : vector<8x32xf32> to vector<8x8xf32>
    %cst_21 = arith.constant dense<0.000000e+00> : vector<8x8xf32>
    %34 = tpu.matmul %32, %33, %cst_21 {dimension_numbers = #tpu.dot_dimension_numbers<[1], [1], [0], [0], [0, 0, 1, 0], [], []>} : vector<8x8xf32>, vector<8x8xf32>, vector<8x8xf32> -> vector<8x8xf32>
    %cst_22 = arith.constant dense<0xFF800000> : vector<8xf32>
    %35 = vector.multi_reduction <maximumf>, %34, %cst_22 [1] : vector<8x8xf32> to vector<8xf32>
    %36 = vector.shape_cast %35 : vector<8xf32> to vector<8x1xf32>
    %37 = vector.broadcast %36 : vector<8x1xf32> to vector<8x8xf32>
    %38 = arith.subf %34, %37 : vector<8x8xf32>
    %39 = math.exp %38 : vector<8x8xf32>
    %cst_23 = arith.constant dense<0.000000e+00> : vector<8xf32>
    %40 = vector.multi_reduction <add>, %39, %cst_23 [1] : vector<8x8xf32> to vector<8xf32>
    %41 = vector.shape_cast %40 : vector<8xf32> to vector<8x1xf32>
    %42 = tpu.reciprocal %41 : vector<8x1xf32> -> vector<8x1xf32>
    %43 = vector.broadcast %42 : vector<8x1xf32> to vector<8x8xf32>
    %44 = arith.mulf %39, %43 : vector<8x8xf32>
    %c0_24 = arith.constant 0 : index
    %c1 = arith.constant 1 : index
    %c0_25 = arith.constant 0 : index
    %c0_26 = arith.constant 0 : index
    %45 = vector.load %arg10[%c0_24, %c1, %c0_25, %c0_26] : memref<1x4x8x8xf32, #tpu.memory_space<vmem>>, vector<1x1x8x8xf32>
    %46 = vector.shape_cast %45 : vector<1x1x8x8xf32> to vector<8x8xf32>
    %47 = vector.shape_cast %44 : vector<8x8xf32> to vector<1x1x8x8xf32>
    tpu.vector_store %arg10[%c0_24, %c1, %c0_25, %c0_26], %47 {strides = array<i32>} : memref<1x4x8x8xf32, #tpu.memory_space<vmem>>, vector<1x1x8x8xf32>,
    %48 = vector.extract_strided_slice %10 {offsets = [0, 8], sizes = [8, 8], strides = [1, 1]} : vector<8x32xf32> to vector<8x8xf32>
    %cst_27 = arith.constant dense<0.000000e+00> : vector<8x8xf32>
    %49 = tpu.matmul %44, %48, %cst_27 {dimension_numbers = #tpu.dot_dimension_numbers<[1], [0], [0], [1], [0, 0, 1, 1], [], []>} : vector<8x8xf32>, vector<8x8xf32>, vector<8x8xf32> -> vector<8x8xf32>
    %c0_28 = arith.constant 0 : index
    %c0_29 = arith.constant 0 : index
    %c8 = arith.constant 8 : index
    %50 = vector.load %arg9[%c0_28, %c0_29, %c8] : memref<1x8x32xf32, #tpu.memory_space<vmem>>, vector<1x8x8xf32>
    %51 = vector.shape_cast %50 : vector<1x8x8xf32> to vector<8x8xf32>
    %52 = vector.shape_cast %49 : vector<8x8xf32> to vector<1x8x8xf32>
    tpu.vector_store %arg9[%c0_28, %c0_29, %c8], %52 {strides = array<i32>} : memref<1x8x32xf32, #tpu.memory_space<vmem>>, vector<1x8x8xf32>,
    %53 = vector.extract_strided_slice %8 {offsets = [0, 16], sizes = [8, 8], strides = [1, 1]} : vector<8x32xf32> to vector<8x8xf32>
    %54 = vector.extract_strided_slice %9 {offsets = [0, 16], sizes = [8, 8], strides = [1, 1]} : vector<8x32xf32> to vector<8x8xf32>
    %cst_30 = arith.constant dense<0.000000e+00> : vector<8x8xf32>
    %55 = tpu.matmul %53, %54, %cst_30 {dimension_numbers = #tpu.dot_dimension_numbers<[1], [1], [0], [0], [0, 0, 1, 0], [], []>} : vector<8x8xf32>, vector<8x8xf32>, vector<8x8xf32> -> vector<8x8xf32>
    %cst_31 = arith.constant dense<0xFF800000> : vector<8xf32>
    %56 = vector.multi_reduction <maximumf>, %55, %cst_31 [1] : vector<8x8xf32> to vector<8xf32>
    %57 = vector.shape_cast %56 : vector<8xf32> to vector<8x1xf32>
    %58 = vector.broadcast %57 : vector<8x1xf32> to vector<8x8xf32>
    %59 = arith.subf %55, %58 : vector<8x8xf32>
    %60 = math.exp %59 : vector<8x8xf32>
    %cst_32 = arith.constant dense<0.000000e+00> : vector<8xf32>
    %61 = vector.multi_reduction <add>, %60, %cst_32 [1] : vector<8x8xf32> to vector<8xf32>
    %62 = vector.shape_cast %61 : vector<8xf32> to vector<8x1xf32>
    %63 = tpu.reciprocal %62 : vector<8x1xf32> -> vector<8x1xf32>
    %64 = vector.broadcast %63 : vector<8x1xf32> to vector<8x8xf32>
    %65 = arith.mulf %60, %64 : vector<8x8xf32>
    %c0_33 = arith.constant 0 : index
    %c2 = arith.constant 2 : index
    %c0_34 = arith.constant 0 : index
    %c0_35 = arith.constant 0 : index
    %66 = vector.load %arg10[%c0_33, %c2, %c0_34, %c0_35] : memref<1x4x8x8xf32, #tpu.memory_space<vmem>>, vector<1x1x8x8xf32>
    %67 = vector.shape_cast %66 : vector<1x1x8x8xf32> to vector<8x8xf32>
    %68 = vector.shape_cast %65 : vector<8x8xf32> to vector<1x1x8x8xf32>
    tpu.vector_store %arg10[%c0_33, %c2, %c0_34, %c0_35], %68 {strides = array<i32>} : memref<1x4x8x8xf32, #tpu.memory_space<vmem>>, vector<1x1x8x8xf32>,
    %69 = vector.extract_strided_slice %10 {offsets = [0, 16], sizes = [8, 8], strides = [1, 1]} : vector<8x32xf32> to vector<8x8xf32>
    %cst_36 = arith.constant dense<0.000000e+00> : vector<8x8xf32>
    %70 = tpu.matmul %65, %69, %cst_36 {dimension_numbers = #tpu.dot_dimension_numbers<[1], [0], [0], [1], [0, 0, 1, 1], [], []>} : vector<8x8xf32>, vector<8x8xf32>, vector<8x8xf32> -> vector<8x8xf32>
    %c0_37 = arith.constant 0 : index
    %c0_38 = arith.constant 0 : index
    %c16 = arith.constant 16 : index
    %71 = vector.load %arg9[%c0_37, %c0_38, %c16] : memref<1x8x32xf32, #tpu.memory_space<vmem>>, vector<1x8x8xf32>
    %72 = vector.shape_cast %71 : vector<1x8x8xf32> to vector<8x8xf32>
    %73 = vector.shape_cast %70 : vector<8x8xf32> to vector<1x8x8xf32>
    tpu.vector_store %arg9[%c0_37, %c0_38, %c16], %73 {strides = array<i32>} : memref<1x8x32xf32, #tpu.memory_space<vmem>>, vector<1x8x8xf32>,
    %74 = vector.extract_strided_slice %8 {offsets = [0, 24], sizes = [8, 8], strides = [1, 1]} : vector<8x32xf32> to vector<8x8xf32>
    %75 = vector.extract_strided_slice %9 {offsets = [0, 24], sizes = [8, 8], strides = [1, 1]} : vector<8x32xf32> to vector<8x8xf32>
    %cst_39 = arith.constant dense<0.000000e+00> : vector<8x8xf32>
    %76 = tpu.matmul %74, %75, %cst_39 {dimension_numbers = #tpu.dot_dimension_numbers<[1], [1], [0], [0], [0, 0, 1, 0], [], []>} : vector<8x8xf32>, vector<8x8xf32>, vector<8x8xf32> -> vector<8x8xf32>
    %cst_40 = arith.constant dense<0xFF800000> : vector<8xf32>
    %77 = vector.multi_reduction <maximumf>, %76, %cst_40 [1] : vector<8x8xf32> to vector<8xf32>
    %78 = vector.shape_cast %77 : vector<8xf32> to vector<8x1xf32>
    %79 = vector.broadcast %78 : vector<8x1xf32> to vector<8x8xf32>
    %80 = arith.subf %76, %79 : vector<8x8xf32>
    %81 = math.exp %80 : vector<8x8xf32>
    %cst_41 = arith.constant dense<0.000000e+00> : vector<8xf32>
    %82 = vector.multi_reduction <add>, %81, %cst_41 [1] : vector<8x8xf32> to vector<8xf32>
    %83 = vector.shape_cast %82 : vector<8xf32> to vector<8x1xf32>
    %84 = tpu.reciprocal %83 : vector<8x1xf32> -> vector<8x1xf32>
    %85 = vector.broadcast %84 : vector<8x1xf32> to vector<8x8xf32>
    %86 = arith.mulf %81, %85 : vector<8x8xf32>
    %c0_42 = arith.constant 0 : index
    %c3 = arith.constant 3 : index
    %c0_43 = arith.constant 0 : index
    %c0_44 = arith.constant 0 : index
    %87 = vector.load %arg10[%c0_42, %c3, %c0_43, %c0_44] : memref<1x4x8x8xf32, #tpu.memory_space<vmem>>, vector<1x1x8x8xf32>
    %88 = vector.shape_cast %87 : vector<1x1x8x8xf32> to vector<8x8xf32>
    %89 = vector.shape_cast %86 : vector<8x8xf32> to vector<1x1x8x8xf32>
    tpu.vector_store %arg10[%c0_42, %c3, %c0_43, %c0_44], %89 {strides = array<i32>} : memref<1x4x8x8xf32, #tpu.memory_space<vmem>>, vector<1x1x8x8xf32>,
    %90 = vector.extract_strided_slice %10 {offsets = [0, 24], sizes = [8, 8], strides = [1, 1]} : vector<8x32xf32> to vector<8x8xf32>
    %cst_45 = arith.constant dense<0.000000e+00> : vector<8x8xf32>
    %91 = tpu.matmul %86, %90, %cst_45 {dimension_numbers = #tpu.dot_dimension_numbers<[1], [0], [0], [1], [0, 0, 1, 1], [], []>} : vector<8x8xf32>, vector<8x8xf32>, vector<8x8xf32> -> vector<8x8xf32>
    %c0_46 = arith.constant 0 : index
    %c0_47 = arith.constant 0 : index
    %c24 = arith.constant 24 : index
    %92 = vector.load %arg9[%c0_46, %c0_47, %c24] : memref<1x8x32xf32, #tpu.memory_space<vmem>>, vector<1x8x8xf32>
    %93 = vector.shape_cast %92 : vector<1x8x8xf32> to vector<8x8xf32>
    %94 = vector.shape_cast %91 : vector<8x8xf32> to vector<1x8x8xf32>
    tpu.vector_store %arg9[%c0_46, %c0_47, %c24], %94 {strides = array<i32>} : memref<1x8x32xf32, #tpu.memory_space<vmem>>, vector<1x8x8xf32>,
    return
  }
  func.func @transform_0(%arg0: i32, %arg1: i32) -> (i32, i32, i32) {
    %c0_i32 = arith.constant 0 : i32
    %c0_i32_0 = arith.constant 0 : i32
    return %arg0, %arg1, %c0_i32 : i32, i32, i32
  }
  func.func @transform_1(%arg0: i32, %arg1: i32) -> (i32, i32, i32) {
    %c0_i32 = arith.constant 0 : i32
    %c0_i32_0 = arith.constant 0 : i32
    %c0_i32_1 = arith.constant 0 : i32
    return %arg0, %c0_i32, %c0_i32_0 : i32, i32, i32
  }
  func.func @transform_2(%arg0: i32, %arg1: i32) -> (i32, i32, i32) {
    %c0_i32 = arith.constant 0 : i32
    %c0_i32_0 = arith.constant 0 : i32
    %c0_i32_1 = arith.constant 0 : i32
    return %arg0, %c0_i32, %c0_i32_0 : i32, i32, i32
  }
  func.func @transform_3(%arg0: i32, %arg1: i32) -> (i32, i32) {
    %c0_i32 = arith.constant 0 : i32
    %c0_i32_0 = arith.constant 0 : i32
    %c0_i32_1 = arith.constant 0 : i32
    return %c0_i32, %c0_i32_0 : i32, i32
  }
  func.func @transform_4(%arg0: i32, %arg1: i32) -> (i32, i32) {
    %c0_i32 = arith.constant 0 : i32
    %c0_i32_0 = arith.constant 0 : i32
    %c0_i32_1 = arith.constant 0 : i32
    return %c0_i32, %c0_i32_0 : i32, i32
  }
  func.func @transform_5(%arg0: i32, %arg1: i32) -> (i32, i32) {
    %c0_i32 = arith.constant 0 : i32
    %c0_i32_0 = arith.constant 0 : i32
    %c0_i32_1 = arith.constant 0 : i32
    return %c0_i32, %c0_i32_0 : i32, i32
  }
  func.func @transform_6(%arg0: i32, %arg1: i32) -> (i32, i32) {
    %c0_i32 = arith.constant 0 : i32
    %c0_i32_0 = arith.constant 0 : i32
    %c0_i32_1 = arith.constant 0 : i32
    return %c0_i32, %c0_i32_0 : i32, i32
  }
  func.func @transform_7(%arg0: i32, %arg1: i32) -> (i32, i32, i32) {
    %c0_i32 = arith.constant 0 : i32
    %c0_i32_0 = arith.constant 0 : i32
    return %arg0, %arg1, %c0_i32 : i32, i32, i32
  }
  func.func @transform_8(%arg0: i32, %arg1: i32) -> (i32, i32, i32, i32) {
    %c0_i32 = arith.constant 0 : i32
    %c0_i32_0 = arith.constant 0 : i32
    %c0_i32_1 = arith.constant 0 : i32
    return %arg0, %c0_i32, %arg1, %c0_i32_0 : i32, i32, i32, i32
  }
}

</mosaic_0001>

<bundles_post_ra>
// kernel: tpu_custom_call.1
= control target key start
LH: loop header
LB: loop body
LE: loop exit
PB: predicated region body
PF: predicated region fallthrough
CT: control target
= control target key end

     0   :  { %s2763_s0 = inlined_call_operand.hbm [shape: f32[2,8,32], index: 0, kind: input, shape index: {}]   ;;  %s2764_s1 = inlined_call_operand.hbm [shape: f32[2,8,32], index: 1, kind: input, shape index: {}]   ;;  %s2765_s2 = inlined_call_operand.hbm [shape: f32[2,8,32], index: 2, kind: input, shape index: {}]   ;;  %s2766_s3 = inlined_call_operand.hbm [shape: f32[32,32], index: 3, kind: input, shape index: {}]   ;;  %s2767_s4 = inlined_call_operand.hbm [shape: f32[32,32], index: 4, kind: input, shape index: {}]   ;;  %s2768_s5 = inlined_call_operand.hbm [shape: f32[32,32], index: 5, kind: input, shape index: {}]   ;;  %s2769_s6 = inlined_call_operand.vmem [shape: f32[1,32], index: 6, kind: input, shape index: {}]   ;;  %s2770_s7 = inlined_call_operand.hbm [shape: f32[2,8,32], index: 7, kind: output, shape index: {0}]   ;;  %s2771_s8 = inlined_call_operand.hbm [shape: f32[2,4,8,8], index: 8, kind: output, shape index: {1}]  }
   0x1   :  { %2800 = sst [smem:[#allocation32_spill]] %s2764_s1 }
   0x2   :  { %2801 = sst [smem:[#allocation33_spill]] %s2766_s3 }
   0x3   :  { %2802 = sst [smem:[#allocation34_spill]] %s2770_s7 }
   0x4   :  { %2803 = sst [smem:[#allocation35_spill]] %s2771_s8 }
   0x5   :  { %14 = vsyncpa [#allocation5], 0 }
   0x6   :  { %16 = vsyncpa [#allocation5 + $0x1], 0 }
   0x7   :  { %17 = vsyncpa [#allocation8], 0 }
   0x8   :  { %19 = vsyncpa [#allocation8 + $0x1], 0 }
   0x9   :  { %20 = vsyncpa [#allocation11], 0 }
   0xa   :  { %21 = vsyncpa [#allocation14], 0 }
   0xb   :  { %22 = vsyncpa [#allocation6], 0 }
   0xc   :  { %24 = vsyncpa [#allocation6 + $0x1], 0 }
   0xd   :  { %25 = vsyncpa [#allocation17], 0 }
   0xe   :  { %27 = vsyncpa [#allocation17 + $0x1], 0  ;;  %s2298_s27 = smov 0   ;;  %s2300_s28 = smov 0  }
   0xf   :  { %s2302_s29 = smov 0   ;;  %s2304_s30 = smov 0  }
  0x10   :  { %s2306_s9 = smov 0   ;;  %s2308_s10 = smov 0  }
  0x11 LB: > { %2804 = sst [smem:[#allocation24_spill]] %s2211_s27  ;;  %s2329_s11 = sadd.s32 4294967295, %s2231_s10   ;;  %s2231_s10 = sphi %s2308_s10, %s33_s10   ;;  %s2227_s9 = sphi %s2306_s9, %s2850_s9   ;;  %s2223_s30 = sphi %s2304_s30, %s2849_s30   ;;  %s2219_s29 = sphi %s2302_s29, %s2853_s29   ;;  %s2215_s28 = sphi %s2300_s28, %s2852_s28   ;;  %s2211_s27 = sphi %s2298_s27, %s2851_s27  }
  0x12   : > { %2805 = sst [smem:[#allocation25_spill]] %s2223_s30  ;;  %s1625_s12 = sadd.s32 4294967294, %s2231_s10  }
  0x13   : > { %2806 = sst [smem:[#allocation26_spill]] %s2227_s9  ;;  %p67_p0 = scmp.ne.s32.totalorder %s2215_s28, %s2211_s27 }
  0x14   : > { %2807 = sst [smem:[#allocation27_spill]] %s2231_s10  ;;  %p2772_p1 = scmp.eq.s32.totalorder %s2329_s11, 0 }
  0x15   : > { %p235_p3 = scmp.eq.s32.totalorder %s1625_s12, 1  ;;  %p1626_p5 = scmp.ge.s32.totalorder %s2231_s10, 1 }
  0x16   : > { %p2338_p4 = por %p2772_p1, %p67_p0  ;;  %p270_p7 = scmp.lt.s32.totalorder %s2231_s10, 3 }
  0x17   : > { %p2343_p6 = por %p235_p3, %p67_p0  ;;  %s2233_s16 = smov [#allocation10]  }
  0x18   : > { %s2808_s13 = scalar_select %p2338_p4, 1, 0 }
  0x19   : > { %s2809_s14 = scalar_select %p2343_p6, 1, 0 }
  0x1a   : > { %p2348_p8 = pnand %p1626_p5, %p270_p7  ;;  %s282_s17 = sshll.u32 %s2233_s16, 4  ;;  %s283_s17 = int_to_ptr.vmem [resolvable:$true] %s282_s17 }
  0x1b   : > { %2810 = sst [smem:[#allocation28_spill]] %s2809_s14  ;;  %s45_s19 = sadd.s32 1, %s2227_s9 }
  0x1c   : > { %s2811_s15 = scalar_select %p2348_p8, 1, 0 }
  0x1d   : > { %p1817_p9 = pneg %p2348_p8  ;;  %s2813_s3 = sld [smem:[#allocation33_spill]] }
  0x1f   : > { %p2357_p11 = pnand %p1817_p9, %p2772_p1 }
  0x21   : > { %s2812_s18 = scalar_select %p2357_p11, 1, 0 }
  0x22   : > { %p2370_p13 = pneg %p2357_p11 }
  0x23   : > { %s1931_s22 = scalar_lea.hbm %s2813_s3, 512 }
  0x24   : > { %p1932_p12 = scmp.ne.s32.totalorder %s2813_s3, %s1931_s22  ;;  %p1938_p5 = scmp.lt.u32.totalorder %s1931_s22, %s2813_s3 }
  0x25   : > { %s2814_s25 = scalar_select %p2370_p13, 1, 0 }
  0x26   : > { %p1934_p0 = pnand %p2370_p13, %p1932_p12 }
  0x28   : > { %p1935_p3 = pneg %p1934_p0 }
  0x2a   : > { %p1940_p7 = pnand %p1938_p5, %p1935_p3 }
  0x2c   : > { %1943 = shalt.err (!%p1940_p7)
}
  0x2d   : > { %s1944_s16 = scalar_lea.vmem %s283_s17, 512  ;;  %p1952_p2 = scmp.lt.s32.totalorder %s283_s17, %s283_s17 }
  0x2e   : > { %p1945_p9 = scmp.ne.s32.totalorder %s283_s17, %s1944_s16  ;;  %p1953_p6 = scmp.lt.s32.totalorder %s1944_s16, %s1944_s16 }
  0x30   : > { %p1947_p10 = pnand %p1945_p9, %p2370_p13  ;;  %p1954_p4 = por %p1953_p6, %p1952_p2 }
  0x32   : > { %p1948_p1 = pneg %p1947_p10 }
  0x34   : > { %p1955_p8 = pnand %p1954_p4, %p1948_p1 }
  0x36   : > { %1958 = shalt.err (!%p1955_p8)
}
  0x37   : > { %s2775_s20 = smov 128   ;;  %s2777_s21 = smov 8  }
  0x38   : > { %1820 = dma.hbm_to_vmem [thread:$0]  (!%p2357_p11), %s2813_s3, 512, %s283_s17, [#allocation11], %s2775_s20, %s2775_s20, %s2777_s21  }
  0x39   : > { %p47_p1 = scmp.ge.s32.totalorder %s45_s19, 2  ;;  %s54_s24 = sadd.s32 1, %s2219_s29 }
  0x3a   : > { %p61_p2 = scmp.ne.s32.totalorder %s2219_s29, %s2215_s28  ;;  %p62_p4 = scmp.eq.s32.totalorder %s2231_s10, 0 }
  0x3b   : > { %s2855_s19 = smov (%p47_p1, %s45_s19), 0  ;;  %p2816_p8 = scmp.eq.s32.totalorder %s2329_s11, 1 }
  0x3c   : > { %2815 = sst [smem:[#allocation29_spill]] %s2855_s19  ;;  %p63_p6 = por %p62_p4, %p61_p2 }
  0x3d   : > { %p2397_p10 = por %p2816_p8, %p61_p2  ;;  %s49_s12 = ssub.s32 %s2227_s9, %s2855_s19 }
  0x3e   : > { %p1847_p12 = scmp.lt.s32.totalorder %s2231_s10, 2  ;;  %p52_p0 = scmp.eq.s32.totalorder %s49_s12, 0 }
  0x3f   : > { %s2817_s26 = scalar_select %p2397_p10, 1, 0 }
  0x40   : > { %s2780_s16 = sand.u32 1, %s2219_s29   ;;  %s2410_s22 = sshll.u32 %s2227_s9, 7 }
  0x41   : > { %2818 = sst [smem:[#allocation30_spill]] %s2817_s26  ;;  %s2407_s17 = sshll.u32 %s2780_s16, 3 }
  0x42   : > { %s2413_s23 = scalar_select %p52_p0, %s2219_s29, %s54_s24  }
  0x43   : > { %p2415_p3 = pnand %p1847_p12, %p63_p6  ;;  %s344_s21 = sand.u32 1, %s2231_s10  }
  0x44   : > { %2819 = sst [smem:[#allocation31_spill]] %s2413_s23  ;;  %s2821_s1 = sld [smem:[#allocation32_spill]] }
  0x45   : > { %s2820_s20 = scalar_select %p2415_p3, 1, 0 }
  0x46   : > { %s348_s16 = scalar_lea.vmem [#allocation7], %s2407_s17  ;;  %s2236_s24 = smov [#allocation12]  }
  0x47   : > { %s355_s9 = sshll.u32 %s348_s16, 4  ;;  %s2429_s23 = sshll.u32 %s2236_s24, 4  ;;  %s2427_s9 = int_to_ptr.vmem [resolvable:$true] %s355_s9  ;;  %s296_s23 = int_to_ptr.vmem [resolvable:$true] %s2429_s23 }
  0x48   : > { %s2431_s14 = scalar_lea.sflag [#allocation8], %s344_s21  ;;  %p2437_p7 = pneg %p2415_p3 }
  0x4a   : > { %s2424_s12 = scalar_lea.hbm %s2821_s1, %s2410_s22  ;;  %s1964_s10 = scalar_lea.hbm %s2821_s1, 256 }
  0x4b   : > { %s1959_s27 = scalar_lea.hbm %s2424_s12, 128  ;;  %p1965_p2 = scmp.lt.u32.totalorder %s2424_s12, %s2821_s1 }
  0x4c   : > { %p1960_p5 = scmp.ne.s32.totalorder %s2424_s12, %s1959_s27  ;;  %p1966_p4 = scmp.lt.u32.totalorder %s1964_s10, %s1959_s27 }
  0x4d   : > { %s2822_s3 = scalar_select %p2437_p7, 1, 0 }
  0x4e   : > { %p1962_p9 = pnand %p2437_p7, %p1960_p5  ;;  %p1967_p6 = por %p1966_p4, %p1965_p2 }
  0x4f   : > { %p1968_p8 = scmp.lt.u32.totalorder %s1959_s27, %s2424_s12 }
  0x50   : > { %p1963_p1 = pneg %p1962_p9 }
  0x51   : > { %p1969_p12 = por %p1968_p8, %p1967_p6 }
  0x53   : > { %p1970_p0 = pnand %p1969_p12, %p1963_p1 }
  0x55   : > { %1973 = shalt.err (!%p1970_p0)
}
  0x56   : > { %s1974_s21 = scalar_lea.vmem %s2427_s9, 128  ;;  %s2237_s19 = smov [#allocation7]  }
  0x57   : > { %p1975_p5 = scmp.ne.s32.totalorder %s2427_s9, %s1974_s21  ;;  %s1979_s16 = sshll.u32 %s2237_s19, 4  ;;  %s1980_s16 = int_to_ptr.vmem [resolvable:$false] %s1979_s16 }
  0x58   : > { %s1981_s7 = scalar_lea.vmem %s1980_s16, 256  ;;  %p1982_p11 = scmp.lt.s32.totalorder %s2427_s9, %s1980_s16 }
  0x59   : > { %p1977_p9 = pnand %p1975_p5, %p2437_p7  ;;  %p1983_p13 = scmp.lt.s32.totalorder %s1981_s7, %s1974_s21 }
  0x5b   : > { %p1978_p10 = pneg %p1977_p9  ;;  %p1984_p2 = por %p1983_p13, %p1982_p11 }
  0x5d   : > { %p1985_p4 = pnand %p1984_p2, %p1978_p10 }
  0x5f   : > { %1988 = shalt.err (!%p1985_p4)
}
  0x60   : > { %1833 = dma.hbm_to_vmem [thread:$0]  (!%p2415_p3), %s2424_s12, 128, %s2427_s9, %s2431_s14  }
  0x61   : > { %s1989_s24 = scalar_lea.hbm %s2767_s4, 512  ;;  %p2823_p11 = scmp.ne.s32.totalorder %s2814_s25, 0 }
  0x62   : > { %p1990_p1 = scmp.ne.s32.totalorder %s2767_s4, %s1989_s24  ;;  %p1996_p6 = scmp.lt.u32.totalorder %s1989_s24, %s2767_s4 }
  0x64   : > { %p1992_p13 = pnand %p1990_p1, %p2823_p11 }
  0x66   : > { %p1993_p10 = pneg %p1992_p13 }
  0x68   : > { %p1998_p8 = pnand %p1996_p6, %p1993_p10 }
  0x6a   : > { %2001 = shalt.err (!%p1998_p8)
}
  0x6b   : > { %s2002_s7 = scalar_lea.vmem %s296_s23, 512  ;;  %p2010_p9 = scmp.lt.s32.totalorder %s296_s23, %s296_s23 }
  0x6c   : > { %p2003_p12 = scmp.ne.s32.totalorder %s296_s23, %s2002_s7  ;;  %p2011_p2 = scmp.lt.s32.totalorder %s2002_s7, %s2002_s7 }
  0x6e   : > { %p2005_p0 = pnand %p2003_p12, %p2823_p11  ;;  %p2012_p4 = por %p2011_p2, %p2010_p9 }
  0x70   : > { %p2006_p5 = pneg %p2005_p0 }
  0x72   : > { %p2013_p3 = pnand %p2012_p4, %p2006_p5 }
  0x74   : > { %2016 = shalt.err (!%p2013_p3)
}
  0x75   : > { %p2824_p1 = scmp.ne.s32.totalorder %s2812_s18, 0  ;;  %s2825_s1 = smov 8  }
  0x76   : > { %s2826_s9 = smov 128   ;;  %s2238_s10 = smov [#allocation13]  }
  0x77   : > { %1823 = dma.hbm_to_vmem [thread:$0]  (!%p2824_p1), %s2767_s4, 512, %s296_s23, [#allocation11], %s2826_s9, %s2826_s9, %s2825_s1  }
  0x78   : > { %s308_s24 = sshll.u32 %s2238_s10, 4  ;;  %s2017_s16 = scalar_lea.hbm %s2768_s5, 512  ;;  %s309_s24 = int_to_ptr.vmem [resolvable:$true] %s308_s24 }
  0x79   : > { %p2018_p3 = scmp.ne.s32.totalorder %s2768_s5, %s2017_s16  ;;  %p2024_p6 = scmp.lt.u32.totalorder %s2017_s16, %s2768_s5 }
  0x7b   : > { %p2020_p13 = pnand %p2018_p3, %p2823_p11 }
  0x7d   : > { %p2021_p10 = pneg %p2020_p13 }
  0x7f   : > { %p2026_p8 = pnand %p2024_p6, %p2021_p10 }
  0x81   : > { %2029 = shalt.err (!%p2026_p8)
}
  0x82   : > { %s2030_s23 = scalar_lea.vmem %s309_s24, 512  ;;  %p2038_p9 = scmp.lt.s32.totalorder %s309_s24, %s309_s24 }
  0x83   : > { %p2031_p12 = scmp.ne.s32.totalorder %s309_s24, %s2030_s23  ;;  %p2039_p2 = scmp.lt.s32.totalorder %s2030_s23, %s2030_s23 }
  0x85   : > { %p2033_p0 = pnand %p2031_p12, %p2823_p11  ;;  %p2040_p4 = por %p2039_p2, %p2038_p9 }
  0x87   : > { %p2034_p5 = pneg %p2033_p0 }
  0x89   : > { %p2041_p7 = pnand %p2040_p4, %p2034_p5 }
  0x8b   : > { %2044 = shalt.err (!%p2041_p7)
}
  0x8c   : > { %1826 = dma.hbm_to_vmem [thread:$0]  (!%p2824_p1), %s2768_s5, 512, %s309_s24, [#allocation14], %s2826_s9, %s2826_s9, %s2825_s1  }
  0x8d   : > { %s2508_s12 = scalar_lea.hbm %s2763_s0, %s2410_s22  ;;  %s329_s18 = scalar_lea.vmem [#allocation4], %s2407_s17 }
  0x8e   : > { %s337_s27 = sshll.u32 %s329_s18, 4  ;;  %s2827_s10 = sand.u32 1, %s2219_s29   ;;  %s338_s27 = int_to_ptr.vmem [resolvable:$true] %s337_s27 }
  0x8f   : > { %s326_s19 = scalar_lea.sflag [#allocation5], %s2827_s10  ;;  %s2045_s21 = scalar_lea.hbm %s2508_s12, 128 }
  0x90   : > { %p2046_p7 = scmp.ne.s32.totalorder %s2508_s12, %s2045_s21  ;;  %p2828_p11 = scmp.ne.s32.totalorder %s2822_s3, 0 }
  0x91   : > { %s2050_s24 = scalar_lea.hbm %s2763_s0, 256  ;;  %p2051_p1 = scmp.lt.u32.totalorder %s2508_s12, %s2763_s0 }
  0x92   : > { %p2048_p3 = pnand %p2046_p7, %p2828_p11  ;;  %p2052_p10 = scmp.lt.u32.totalorder %s2050_s24, %s2045_s21 }
  0x93   : > { %p2054_p8 = scmp.lt.u32.totalorder %s2045_s21, %s2508_s12 }
  0x94   : > { %p2049_p13 = pneg %p2048_p3  ;;  %p2053_p6 = por %p2052_p10, %p2051_p1 }
  0x96   : > { %p2055_p12 = por %p2054_p8, %p2053_p6 }
  0x98   : > { %p2056_p0 = pnand %p2055_p12, %p2049_p13 }
  0x9a   : > { %2059 = shalt.err (!%p2056_p0)
}
  0x9b   : > { %s2060_s23 = scalar_lea.vmem %s338_s27, 128  ;;  %s2239_s8 = smov [#allocation4]  }
  0x9c   : > { %p2061_p5 = scmp.ne.s32.totalorder %s338_s27, %s2060_s23  ;;  %s2065_s30 = sshll.u32 %s2239_s8, 4  ;;  %s2066_s30 = int_to_ptr.vmem [resolvable:$false] %s2065_s30 }
  0x9d   : > { %s2067_s25 = scalar_lea.vmem %s2066_s30, 256  ;;  %p2068_p4 = scmp.lt.s32.totalorder %s338_s27, %s2066_s30 }
  0x9e   : > { %p2063_p9 = pnand %p2061_p5, %p2828_p11  ;;  %p2069_p7 = scmp.lt.s32.totalorder %s2067_s25, %s2060_s23 }
  0xa0   : > { %p2064_p2 = pneg %p2063_p9  ;;  %p2070_p3 = por %p2069_p7, %p2068_p4 }
  0xa2   : > { %p2071_p1 = pnand %p2070_p3, %p2064_p2 }
  0xa4   : > { %2074 = shalt.err (!%p2071_p1)
}
  0xa5   : > { %p2829_p10 = scmp.ne.s32.totalorder %s2820_s20, 0  ;;  %s2534_s10 = scalar_lea.hbm %s2765_s2, %s2410_s22 }
  0xa6   : > { %s366_s21 = scalar_lea.vmem [#allocation9], %s2407_s17  ;;  %s2075_s9 = scalar_lea.hbm %s2534_s10, 128 }
  0xa7   : > { %1830 = dma.hbm_to_vmem [thread:$0]  (!%p2829_p10), %s2508_s12, 128, %s338_s27, %s326_s19  }
  0xa8   : > { %s373_s1 = sshll.u32 %s366_s21, 4  ;;  %p2076_p13 = scmp.ne.s32.totalorder %s2534_s10, %s2075_s9  ;;  %s374_s1 = int_to_ptr.vmem [resolvable:$true] %s373_s1 }
  0xa9   : > { %s2080_s12 = scalar_lea.hbm %s2765_s2, 256  ;;  %p2081_p12 = scmp.lt.u32.totalorder %s2534_s10, %s2765_s2 }
  0xaa   : > { %p2078_p6 = pnand %p2076_p13, %p2828_p11  ;;  %p2082_p0 = scmp.lt.u32.totalorder %s2080_s12, %s2075_s9 }
  0xab   : > { %p2084_p9 = scmp.lt.u32.totalorder %s2075_s9, %s2534_s10 }
  0xac   : > { %p2079_p8 = pneg %p2078_p6  ;;  %p2083_p5 = por %p2082_p0, %p2081_p12 }
  0xae   : > { %p2085_p2 = por %p2084_p9, %p2083_p5 }
  0xb0   : > { %p2086_p4 = pnand %p2085_p2, %p2079_p8 }
  0xb2   : > { %2089 = shalt.err (!%p2086_p4)
}
  0xb3   : > { %s2090_s17 = scalar_lea.vmem %s374_s1, 128  ;;  %s2240_s22 = smov [#allocation9]  }
  0xb4   : > { %p2091_p7 = scmp.ne.s32.totalorder %s374_s1, %s2090_s17  ;;  %s2095_s7 = sshll.u32 %s2240_s22, 4  ;;  %s2096_s7 = int_to_ptr.vmem [resolvable:$false] %s2095_s7 }
  0xb5   : > { %s2097_s23 = scalar_lea.vmem %s2096_s7, 256  ;;  %p2098_p13 = scmp.lt.s32.totalorder %s374_s1, %s2096_s7 }
  0xb6   : > { %p2093_p3 = pnand %p2091_p7, %p2828_p11  ;;  %p2099_p6 = scmp.lt.s32.totalorder %s2097_s23, %s2090_s17 }
  0xb8   : > { %p2094_p1 = pneg %p2093_p3  ;;  %p2100_p10 = por %p2099_p6, %p2098_p13 }
  0xba   : > { %p2101_p0 = pnand %p2100_p10, %p2094_p1 }
  0xbc   : > { %2104 = shalt.err (!%p2101_p0)
}
  0xbd   : > { %p2830_p12 = scmp.ne.s32.totalorder %s2820_s20, 0  ;;  %p2831_p8 = scmp.ne.s32.totalorder %s2811_s15, 0 }
  0xbe   : > { %s2558_s3 = sand.u32 (!%p2831_p8), 1, %s2215_s28   ;;  %p2832_p11 = scmp.ne.s32.totalorder (!%p2831_p8), %s2808_s13, 0 }
  0xbf   : > { %1836 = dma.hbm_to_vmem [thread:$0]  (!%p2830_p12), %s2534_s10, 128, %s374_s1, %s2431_s14  }
  0xc0   : > { %382 = sbr.rel (%p2831_p8) target bundleno = 1444 (0x5a4), region = 48  ;;  %s2561_s8 = sshll.u32 (!%p2831_p8), %s2558_s3, 3 }
  0xc1   : > { %s385_s30 = scalar_lea.sflag (!%p2831_p8), [#allocation5], %s2558_s3  ;;  %s388_s25 = scalar_lea.vmem (!%p2831_p8), [#allocation4], %s2561_s8 }
  0xc7   : > { %2186 = dma.done.wait (%p2832_p11), %s385_s30, 128  }
  0xc8   : > { %2188 = vsyncadd (%p2832_p11), %s385_s30, 4294967168  ;;  %s393_s14 = sand.u32 1, %s2329_s11   ;;  %s397_s20 = scalar_lea.vmem [#allocation7], %s2561_s8 }
  0xc9   : > { %s394_s15 = scalar_lea.sflag [#allocation8], %s393_s14 }
  0xca   : > { %2190 = dma.done.wait (%p2832_p11), %s394_s15, 256  }
  0xcb   : > { %2192 = vsyncadd (%p2832_p11), %s394_s15, 4294967040  ;;  %s406_s26 = scalar_lea.vmem [#allocation9], %s2561_s8  ;;  %p2833_p10 = scmp.eq.s32.totalorder %s2329_s11, 0 }
  0xcd   : > { %2194 = dma.done.wait (%p2833_p10), [#allocation11], 1024   ;;  %p2834_p5 = pmov %p2833_p10 }
  0xcf   : > { %2196 = vsyncadd (%p2834_p5), [#allocation11], 4294966272  ;;  %p2835_p9 = pmov %p2834_p5 }
  0xd0   : > { %p2836_p2 = pmov %p2834_p5 }
  0xd1   : > { %2198 = dma.done.wait (%p2835_p9), [#allocation14], 512  }
  0xd2   : > { %2200 = vsyncadd (%p2836_p2), [#allocation14], 4294966784  ;;  %v2241_v0 = vmov 0.0|0.0   ;;  %vm2242_vm0 = vmmov 0   ;;  %v2243_v1 = vmov 0.0   ;;  %v471_v2 = vld [vmem:[#allocation12] sm:$0xff] }
  0xd3   : > { %1777 = vmatprep.subr.bf16.mxu0 %v2241_v0  ;;  %1712 = vmatprep.mubr.msk.f32.mxu0 %vm2242_vm0, %v2243_v1  ;;  %v472_v3 = vld [vmem:[#allocation12 + $0x8] sm:$0xff]  ;;  %v473_v4 = vld [vmem:[#allocation12 + $0x10] sm:$0xff]  ;;  %v474_v6 = vld [vmem:[#allocation12 + $0x18] sm:$0xff]  ;;  %vm475_vm1 = vcmask 261120   ;;  %vm718_vm2 = vcmask 64512   ;;  %s2244_s11 = smov 112  }
  0xd4   : > { %1783 = vmatprep.subr.bf16.mxu1 %v2241_v0  ;;  %1723 = vmatprep.mubr.msk.f32.mxu1 %vm2242_vm0, %v2243_v1  ;;  %v1778_v5 = vpack.c.bf16 %v472_v3, %v471_v2  ;;  %v1781_v7 = vpack.c.bf16 %v474_v6, %v473_v4  ;;  %v550_v8 = vld [vmem:[#allocation13] sm:$0xff]  ;;  %v551_v9 = vld [vmem:[#allocation13 + $0x8] sm:$0xff]  ;;  %v639_v15 = vld [vmem:[#allocation10 + $0x10] sm:$0xff]  ;;  %s2245_s13 = smov 120   ;;  %s2246_s18 = smov 104  }
  0xd5   : > { %v637_v10 = vld [vmem:[#allocation10] sm:$0xff]  ;;  %v638_v11 = vld [vmem:[#allocation10 + $0x8] sm:$0xff]  ;;  %v1784_v12 = vpack.c.bf16 %v551_v9, %v550_v8  ;;  %v640_v16 = vld [vmem:[#allocation10 + $0x18] sm:$0xff]  ;;  %s1645_s1 = sshll.u32 %s2558_s3, 5  ;;  %s2837_s24 = sld [smem:[#allocation25_spill]] }
  0xd6   : > { %1779 = vmatpush3.bf16.msra.mxu0 %v1778_v5  ;;  %v470_v13 = vld [vmem:[%s397_s20] sm:$0xff]  ;;  %v1790_v14 = vpack.c.bf16 %v638_v11, %v637_v10  ;;  %v1793_v17 = vpack.c.bf16 %v640_v16, %v639_v15  ;;  %v636_v18 = vld [vmem:[%s388_s25] sm:$0xff]  ;;  %s2644_s9 = scalar_lea.vmem [#allocation16], %s1645_s1  ;;  %s2838_s16 = sld [smem:[#allocation30_spill]] }
  0xd7   : > { %1780 = vmatprep.subr.bf16.mxu0 %v2241_v0  ;;  %1785 = vmatpush3.bf16.msra.mxu1 %v1784_v12  ;;  %v552_v19 = vld [vmem:[#allocation13 + $0x10] sm:$0xff]  ;;  %v553_v20 = vld [vmem:[#allocation13 + $0x18] sm:$0xff]  ;;  %v1647_v29 = vld [vmem:[%s2769_s6] ss:$0 sm:$0xff]  ;;  %s2667_s12 = scalar_lea.vmem [#allocation15], %s2561_s8  ;;  %s1435_s19 = sshll.u32 %s2644_s9, 4  ;;  %s2678_s19 = int_to_ptr.vmem [resolvable:$true] %s1435_s19 }
  0xd8   : > { %1786 = vmatprep.subr.bf16.mxu1 %v2241_v0  ;;  %v1787_v21 = vpack.c.bf16 %v553_v20, %v552_v19  ;;  %v549_v22 = vld [vmem:[%s406_s26] sm:$0xff]  ;;  %s2839_s7 = sld [smem:[#allocation35_spill]]  ;;  %s2247_s30 = smov 8  }
  0xd9   : > { %s1407_s8 = scalar_lea.sflag [#allocation17], %s2558_s3  ;;  %s2105_s25 = scalar_lea.vmem %s2678_s19, 512 }
  0xda   : > { %1782 = vmatpush3.bf16.msra.mxu0 %v1781_v7  ;;  %p2106_p4 = scmp.ne.s32.totalorder %s2678_s19, %s2105_s25  ;;  %s2248_s14 = smov [#allocation16]  }
  0xdb   : > { %1789 = vmatprep.subr.bf16.mxu0 %v2241_v0  ;;  %1788 = vmatpush3.bf16.msra.mxu1 %v1787_v21  ;;  %s1672_s27 = sshll.u32 %s2837_s24, 9  ;;  %s2109_s15 = sshll.u32 %s2248_s14, 4  ;;  %s2110_s15 = int_to_ptr.vmem [resolvable:$false] %s2109_s15 }
  0xdc   : > { %1737 = vmatprep.subr.mxu1 %v2243_v1  ;;  %p2840_p7 = scmp.ne.s32.totalorder %s2838_s16, 0  ;;  %s2111_s20 = scalar_lea.vmem %s2110_s15, 1024 }
  0xdd   : > { %1713 = vmatmul.mubr.msk.f32.vlgmr.msra.gmra.mrb[0].mxu0 %vm475_vm1, %v470_v13  ;;  %p2112_p13 = scmp.lt.s32.totalorder %s2678_s19, %s2110_s15  ;;  %p2113_p6 = scmp.lt.s32.totalorder %s2111_s20, %s2105_s25 }
  0xde   : > { %1791 = vmatpush3.bf16.msra.mxu0 %v1790_v14  ;;  %1734 = vmatprep.mubr.msk.f32.mxu0 %vm2242_vm0, %v2243_v1  ;;  %s2676_s23 = scalar_lea.hbm %s2839_s7, %s1672_s27  ;;  %p2107_p3 = pnand %p2106_p4, %p2840_p7 }
  0xdf   : > { %1792 = vmatprep.subr.bf16.mxu0 %v2241_v0  ;;  %1724 = vmatmul.mubr.msk.f32.vlgmr.msra.gmra.mrb[0].mxu1 %vm475_vm1, %v549_v22  ;;  %p2114_p0 = por %p2113_p6, %p2112_p13 }
  0xe0   : > { %1739 = vmatprep.mubr.msk.f32.mxu1 %vm2242_vm0, %v2243_v1  ;;  %p2108_p1 = pneg %p2107_p3 }
  0xe2   : > { %1794 = vmatpush3.bf16.msra.mxu0 %v1793_v17  ;;  %p2115_p12 = pnand %p2114_p0, %p2108_p1 }
  0xe3   : > { %1747 = vmatprep.subr.mxu0 %v2243_v1 }
  0xe5   : > { %1735 = vmatmul.mubr.msk.f32.vlgmr.msra.gmra.mrb[2].mxu0 %vm475_vm1, %v636_v18 }
  0xe6   : > { %1749 = vmatprep.mubr.msk.f32.mxu0 %vm2242_vm0, %v2243_v1 }
 0x1b0   : > { %v545_v23 = vpop.f32.mrb[0].mxu0 }
 0x1b1   : > { %634 = vst.msk [vmem:[#allocation2] sm:$0xff] %vm475_vm1, %v545_v23  ;;  %v1714_v24 = vpop.f32.mrb[1].mxu0 }
 0x1b2   : > { %v630_v30 = vpop.f32.mrb[0].mxu1 }
 0x1b3   : > { %v631_v31 = vadd.f32 %v1647_v29, %v630_v30  ;;  %v1725_v32 = vpop.f32.mrb[1].mxu1 }
 0x1b5   : > { %635 = vst.msk [vmem:[#allocation3] sm:$0xff] %vm475_vm1, %v631_v31 }
 0x1b8   : > { %v716_v25 = vld [vmem:[#allocation2] sm:$0xff]  ;;  %v711_v26 = vpop.f32.mrb[2].mxu0 }
 0x1b9   : > { %1057 = vrot.lane.b32.xlu1 %v716_v25, %s2244_s11  ;;  %883 = vrot.lane.b32.xlu0 %v716_v25, %s2245_s13  ;;  %v715_v27 = vmul.f32 0.35355338, %v711_v26  ;;  %v1736_v28 = vpop.f32.mrb[3].mxu0 }
 0x1ba   : > { %1738 = vmatpush3.xpose.msk.msra.mxu1 %vm718_vm2, %v716_v25 }
 0x1bb   : > { %1742 = vmatprep.subr.mxu1 %v2243_v1 }
 0x1bc   : > { %v717_v39 = vld [vmem:[#allocation3] sm:$0xff] }
 0x1bd   : > { %1740 = vmatmul.mubr.msk.f32.vlgmr.msra.gmra.mrb[2].mxu1 %vm718_vm2, %v715_v27  ;;  %1055 = vrot.lane.b32.xlu1 %v715_v27, %s2244_s11 }
 0x1be   : > { %881 = vrot.lane.b32.xlu0 %v715_v27, %s2245_s13  ;;  %1744 = vmatprep.mubr.msk.f32.mxu1 %vm2242_vm0, %v2243_v1 }
 0x1bf   : > { %1743 = vmatpush3.msra.mxu1 %v717_v39 }
 0x1c0   : > { %1752 = vmatprep.subr.mxu1 %v2243_v1 }
 0x1c1   : > { %1228 = vrot.lane.b32.xlu1 %v715_v27, %s2246_s18 }
 0x1c2   : > { %1230 = vrot.lane.b32.xlu0 %v716_v25, %s2246_s18 }
 0x22b   : > { %v884_v33 = vpop.permute.xlu0 %883  ;;  %v1058_v34 = vpop.permute.xlu1 %1057 }
 0x22c   : > { %1748 = vmatpush3.xpose.msk.msra.mxu0 %vm718_vm2, %v884_v33 }
 0x22d   : > { %1757 = vmatprep.subr.mxu0 %v2243_v1 }
 0x22f   : > { %v1056_v36 = vpop.permute.xlu1 %1055 }
 0x230   : > { %v882_v35 = vpop.permute.xlu0 %881 }
 0x231   : > { %1750 = vmatmul.mubr.msk.f32.vlgmr.msra.gmra.mrb[4].mxu0 %vm718_vm2, %v882_v35 }
 0x232   : > { %1758 = vmatpush3.xpose.msk.msra.mxu0 %vm718_vm2, %v1058_v34  ;;  %1759 = vmatprep.mubr.msk.f32.mxu0 %vm2242_vm0, %v2243_v1 }
 0x233   : > { %1767 = vmatprep.subr.mxu0 %v2243_v1  ;;  %v1229_v38 = vpop.permute.xlu1 %1228 }
 0x234   : > { %v1231_v37 = vpop.permute.xlu0 %1230 }
 0x235   : > { %1760 = vmatmul.mubr.msk.f32.vlgmr.msra.gmra.mrb[6].mxu0 %vm718_vm2, %v1056_v36 }
 0x236   : > { %1768 = vmatpush3.xpose.msk.msra.mxu0 %vm718_vm2, %v1231_v37  ;;  %1769 = vmatprep.mubr.msk.f32.mxu0 %vm2242_vm0, %v2243_v1 }
 0x239   : > { %1770 = vmatmul.mubr.msk.f32.vlgmr.msra.gmra.mrb[8].mxu0 %vm718_vm2, %v1229_v38 }
 0x290   : > { %v791_v40 = vpop.f32.mrb[2].mxu1 }
 0x291   : > { %v1741_v41 = vpop.f32.mrb[3].mxu1  ;;  %v795_v42 = vsel %vm718_vm2, %v791_v40, -inf }
 0x292   : > { %796 = vmax.xlane.f32.xlu0 %v795_v42 }
 0x304   : > { %v955_v43 = vpop.f32.mrb[4].mxu0 }
 0x305   : > { %v1751_v44 = vpop.f32.mrb[5].mxu0  ;;  %v959_v45 = vsel %vm718_vm2, %v955_v43, -inf }
 0x306   : > { %960 = vmax.xlane.f32.xlu1 %v959_v45 }
 0x308   : > { %v1129_v46 = vpop.f32.mrb[6].mxu0 }
 0x309   : > { %v1761_v47 = vpop.f32.mrb[7].mxu0  ;;  %v1133_v48 = vsel %vm718_vm2, %v1129_v46, -inf }
 0x30a   : > { %1134 = vmax.xlane.f32.xlu0 %v1133_v48 }
 0x30c   : > { %v1302_v49 = vpop.f32.mrb[8].mxu0 }
 0x30d   : > { %v1771_v50 = vpop.f32.mrb[9].mxu0  ;;  %v1306_v51 = vsel %vm718_vm2, %v1302_v49, -inf }
 0x30e   : > { %1307 = vmax.xlane.f32.xlu0 %v1306_v51 }
 0x317   : > { %973 = vrot.lane.b32.xlu1 %v717_v39, %s2245_s13 }
 0x31f   : > { %v797_v52 = vpop.xlane.xlu0 %796 }
 0x320   : > { %v798_v53 = vsub.f32 %v791_v40, %v797_v52 }
 0x322   : > { %v799_v54 = vmul.f32 1.442695, %v798_v53 }
 0x324   : > { %1915 = vpow2.f32 %v799_v54 }
 0x32e   : > { %v1916_v55 = vpop.eup %1915 }
 0x32f   : > { %v801_v56 = vsel %vm718_vm2, %v1916_v55, 0.0 }
 0x33b   : > { %802 = vadd.xlane.f32.xlu1 %v801_v56 }
 0x393   : > { %v961_v57 = vpop.xlane.xlu1 %960 }
 0x394   : > { %v962_v58 = vsub.f32 %v955_v43, %v961_v57 }
 0x396   : > { %v963_v59 = vmul.f32 1.442695, %v962_v58 }
 0x397   : > { %v1135_v60 = vpop.xlane.xlu0 %1134  ;;  %v974_v9 = vpop.permute.xlu1 %973 }
 0x398   : > { %1917 = vpow2.f32 %v963_v59  ;;  %v1136_v61 = vsub.f32 %v1129_v46, %v1135_v60 }
 0x39a   : > { %v1137_v62 = vmul.f32 1.442695, %v1136_v61 }
 0x39b   : > { %v1308_v63 = vpop.xlane.xlu0 %1307 }
 0x39c   : > { %1919 = vpow2.f32 %v1137_v62  ;;  %v1309_v0 = vsub.f32 %v1302_v49, %v1308_v63 }
 0x39e   : > { %v1310_v2 = vmul.f32 1.442695, %v1309_v0 }
 0x3a0   : > { %1921 = vpow2.f32 %v1310_v2 }
 0x3a2   : > { %v1918_v3 = vpop.eup %1917 }
 0x3a3   : > { %v965_v4 = vsel %vm718_vm2, %v1918_v3, 0.0 }
 0x3a4   : > { %966 = vadd.xlane.f32.xlu0 %v965_v4 }
 0x3a6   : > { %v1920_v5 = vpop.eup %1919 }
 0x3a7   : > { %v1139_v6 = vsel %vm718_vm2, %v1920_v5, 0.0 }
 0x3a8   : > { %1140 = vadd.xlane.f32.xlu1 %v1139_v6 }
 0x3aa   : > { %v1922_v7 = vpop.eup %1921 }
 0x3ab   : > { %v1312_v8 = vsel %vm718_vm2, %v1922_v7, 0.0 }
 0x3ac   : > { %1313 = vadd.xlane.f32.xlu0 %v1312_v8 }
 0x3b9   : > { %1319 = vrot.lane.b32.xlu1 %v717_v39, %s2246_s18 }
 0x3c2   : > { %1146 = vrot.lane.b32.xlu0 %v717_v39, %s2244_s11 }
 0x3c8   : > { %v803_v10 = vpop.xlane.xlu1 %802 }
 0x3c9   : > { %1923 = vrcp.f32 %v803_v10 }
 0x3d3   : > { %v1924_v11 = vpop.eup %1923 }
 0x3d4   : > { %v805_v12 = vmul.f32 %v1924_v11, %v1916_v55 }
 0x3d6   : > { %806 = vst.msk [vmem:[%s2644_s9] sm:$0xff] %vm718_vm2, %v805_v12  ;;  %1745 = vmatmul.mubr.msk.f32.vlgmr.msra.gmra.mrb[4].mxu1 %vm718_vm2, %v805_v12 }
 0x3d7   : > { %1753 = vmatpush3.msra.mxu1 %v974_v9  ;;  %1754 = vmatprep.mubr.msk.f32.mxu1 %vm2242_vm0, %v2243_v1 }
 0x3d8   : > { %1762 = vmatprep.subr.mxu1 %v2243_v1 }
 0x431   : > { %v967_v13 = vpop.xlane.xlu0 %966 }
 0x432   : > { %1925 = vrcp.f32 %v967_v13 }
 0x435   : > { %v1141_v14 = vpop.xlane.xlu1 %1140 }
 0x436   : > { %1927 = vrcp.f32 %v1141_v14 }
 0x439   : > { %v1314_v15 = vpop.xlane.xlu0 %1313  ;;  %v1320_v21 = vpop.permute.xlu1 %1319 }
 0x43a   : > { %1929 = vrcp.f32 %v1314_v15 }
 0x43c   : > { %v1926_v16 = vpop.eup %1925 }
 0x43d   : > { %v969_v17 = vmul.f32 %v1926_v16, %v1918_v3  ;;  %v1147_v18 = vpop.permute.xlu0 %1146 }
 0x43f   : > { %1655 = vst.msk [vmem:[%s2644_s9 + $0x8] sm:$0xff] %vm718_vm2, %v969_v17  ;;  %1755 = vmatmul.mubr.msk.f32.vlgmr.msra.gmra.mrb[6].mxu1 %vm718_vm2, %v969_v17 }
 0x440   : > { %v1928_v19 = vpop.eup %1927  ;;  %1763 = vmatpush3.msra.mxu1 %v1147_v18  ;;  %1764 = vmatprep.mubr.msk.f32.mxu1 %vm2242_vm0, %v2243_v1 }
 0x441   : > { %v1143_v20 = vmul.f32 %v1928_v19, %v1920_v5  ;;  %1772 = vmatprep.subr.mxu1 %v2243_v1 }
 0x443   : > { %1659 = vst.msk [vmem:[%s2644_s9 + $0x10] sm:$0xff] %vm718_vm2, %v1143_v20  ;;  %1765 = vmatmul.mubr.msk.f32.vlgmr.msra.gmra.mrb[8].mxu1 %vm718_vm2, %v1143_v20 }
 0x444   : > { %v1930_v22 = vpop.eup %1929  ;;  %1773 = vmatpush3.msra.mxu1 %v1320_v21  ;;  %1774 = vmatprep.mubr.msk.f32.mxu1 %vm2242_vm0, %v2243_v1 }
 0x445   : > { %v1316_v23 = vmul.f32 %v1930_v22, %v1922_v7 }
 0x447   : > { %1663 = vst.msk [vmem:[%s2644_s9 + $0x18] sm:$0xff] %vm718_vm2, %v1316_v23  ;;  %1775 = vmatmul.mubr.msk.f32.vlgmr.msra.gmra.mrb[10].mxu1 %vm718_vm2, %v1316_v23 }
 0x4a9   : > { %v876_v24 = vpop.f32.mrb[4].mxu1 }
 0x4aa   : > { %880 = vst.msk [vmem:[%s2667_s12] sm:$0xff] %vm718_vm2, %v876_v24  ;;  %v1746_v25 = vpop.f32.mrb[5].mxu1 }
 0x512   : > { %v1045_v26 = vpop.f32.mrb[6].mxu1 }
 0x513   : > { %1050 = vrot.lane.b32.xlu1 %v1045_v26, %s2247_s30  ;;  %v1756_v1 = vpop.f32.mrb[7].mxu1 }
 0x514   : > { %2118 = shalt.err (!%p2115_p12)
}
 0x515   : > { %s2119_s26 = scalar_lea.hbm %s2676_s23, 512  ;;  %s2123_s18 = scalar_lea.hbm %s2839_s7, 1024 }
 0x516   : > { %p2120_p8 = scmp.ne.s32.totalorder %s2676_s23, %s2119_s26  ;;  %p2124_p5 = scmp.lt.u32.totalorder %s2676_s23, %s2839_s7 }
 0x517   : > { %p2125_p9 = scmp.lt.u32.totalorder %s2123_s18, %s2119_s26  ;;  %p2127_p4 = scmp.lt.u32.totalorder %s2119_s26, %s2676_s23 }
 0x518   : > { %p2121_p11 = pnand %p2120_p8, %p2840_p7 }
 0x519   : > { %p2126_p2 = por %p2125_p9, %p2124_p5 }
 0x51a   : > { %p2122_p10 = pneg %p2121_p11 }
 0x51b   : > { %p2128_p3 = por %p2127_p4, %p2126_p2 }
 0x51d   : > { %p2129_p1 = pnand %p2128_p3, %p2122_p10 }
 0x51f   : > { %2132 = shalt.err (!%p2129_p1)
}
 0x520   : > { %s2249_s1 = smov 128   ;;  %v1218_v27 = vpop.f32.mrb[8].mxu1  ;;  %s2250_s9 = smov 16   ;;  %vm1053_vm3 = vcmask 130112   ;;  %vm1226_vm4 = vcmask 195712   ;;  %vm1399_vm5 = vcmask 261312  }
 0x521   : > { %1814 = dma.vmem_to_hbm [thread:$0]  (%p2840_p7), %s2678_s19, 512, %s2676_s23, %s1407_s8, %s2249_s1, %s2249_s1, %s2247_s30   ;;  %v1766_v28 = vpop.f32.mrb[9].mxu1 }
 0x522   : > { %1223 = vrot.lane.b32.xlu0 %v1218_v27, %s2250_s9  ;;  %v1391_v29 = vpop.f32.mrb[10].mxu1  ;;  %s2251_s27 = smov 24   ;;  %s1667_s17 = sshll.u32 %s2837_s24, 7 }
 0x523   : > { %1396 = vrot.lane.b32.xlu1 %v1391_v29, %s2251_s27  ;;  %v1776_v30 = vpop.f32.mrb[11].mxu1  ;;  %s1421_s22 = sshll.u32 %s2667_s12, 4  ;;  %s2841_s30 = sld [smem:[#allocation34_spill]]  ;;  %s2715_s22 = int_to_ptr.vmem [resolvable:$true] %s1421_s22 }
 0x524   : > { %s1402_s14 = scalar_lea.sflag [#allocation6], %s2558_s3  ;;  %s2133_s15 = scalar_lea.vmem %s2715_s22, 128 }
 0x525   : > { %p2134_p13 = scmp.ne.s32.totalorder %s2715_s22, %s2133_s15  ;;  %s2252_s24 = smov [#allocation15]  }
 0x526   : > { %s2137_s20 = sshll.u32 %s2252_s24, 4  ;;  %s2138_s20 = int_to_ptr.vmem [resolvable:$false] %s2137_s20 }
 0x527   : > { %p2135_p6 = pnand %p2134_p13, %p2840_p7  ;;  %s2139_s26 = scalar_lea.vmem %s2138_s20, 256 }
 0x528   : > { %p2140_p12 = scmp.lt.s32.totalorder %s2715_s22, %s2138_s20  ;;  %p2141_p8 = scmp.lt.s32.totalorder %s2139_s26, %s2133_s15 }
 0x529   : > { %s2842_s8 = smov %s2841_s30  ;;  %s2713_s25 = scalar_lea.hbm %s2841_s30, %s1667_s17 }
 0x52a   : > { %p2136_p0 = pneg %p2135_p6  ;;  %p2142_p11 = por %p2141_p8, %p2140_p12 }
 0x52c   : > { %p2143_p10 = pnand %p2142_p11, %p2136_p0 }
 0x585   : > { %v1051_v31 = vpop.permute.xlu1 %1050 }
 0x586   : > { %1054 = vst.msk [vmem:[%s2667_s12] sm:$0xff] %vm1053_vm3, %v1051_v31 }
 0x594   : > { %v1224_v32 = vpop.permute.xlu0 %1223 }
 0x595   : > { %1227 = vst.msk [vmem:[%s2667_s12] sm:$0xff] %vm1226_vm4, %v1224_v32  ;;  %v1397_v33 = vpop.permute.xlu1 %1396 }
 0x596   : > { %1400 = vst.msk [vmem:[%s2667_s12] sm:$0xff] %vm1399_vm5, %v1397_v33 }
 0x597   : > { %2146 = shalt.err (!%p2143_p10)
}
 0x598   : > { %s2147_s3 = scalar_lea.hbm %s2713_s25, 128  ;;  %s2151_s13 = scalar_lea.hbm %s2842_s8, 256 }
 0x599   : > { %p2148_p5 = scmp.ne.s32.totalorder %s2713_s25, %s2147_s3  ;;  %p2152_p4 = scmp.lt.u32.totalorder %s2713_s25, %s2842_s8 }
 0x59a   : > { %p2153_p3 = scmp.lt.u32.totalorder %s2151_s13, %s2147_s3  ;;  %p2155_p13 = scmp.lt.u32.totalorder %s2147_s3, %s2713_s25 }
 0x59b   : > { %p2149_p9 = pnand %p2148_p5, %p2840_p7 }
 0x59c   : > { %p2154_p1 = por %p2153_p3, %p2152_p4 }
 0x59d   : > { %p2150_p2 = pneg %p2149_p9 }
 0x59e   : > { %p2156_p6 = por %p2155_p13, %p2154_p1 }
 0x5a0   : > { %p2157_p0 = pnand %p2156_p6, %p2150_p2 }
 0x5a2   : > { %2160 = shalt.err (!%p2157_p0)
}
 0x5a3   : > { %1813 = dma.vmem_to_hbm [thread:$0]  (%p2840_p7), %s2715_s22, 128, %s2713_s25, %s1402_s14  }
 0x5a4 PF: > { %s2843_s21 = sld [smem:[#allocation24_spill]]  ;;  %s2844_s1 = sld [smem:[#allocation28_spill]] }
 0x5a5   : > { %s2845_s9 = sld [smem:[#allocation27_spill]] }
 0x5aa   : > { %s1450_s27 = sand.u32 1, %s2843_s21   ;;  %p2846_p12 = scmp.ne.s32.totalorder %s2844_s1, 0 }
 0x5ab   : > { %p2847_p8 = scmp.ge.s32.totalorder %s2845_s9, 2  ;;  %s1451_s17 = scalar_lea.sflag [#allocation6], %s1450_s27 }
 0x5ad   : > { %p1838_p11 = pnand %p2847_p8, %p2846_p12 }
 0x5af   : > { %2202 = dma.done.wait (!%p1838_p11), %s1451_s17, 128  }
 0x5b0   : > { %2204 = vsyncadd (!%p1838_p11), %s1451_s17, 4294967168  ;;  %s1460_s19 = scalar_lea.sflag [#allocation17], %s1450_s27 }
 0x5b1   : > { %2206 = dma.done.wait (!%p1838_p11), %s1460_s19, 512  }
 0x5b2   : > { %2208 = vsyncadd (!%p1838_p11), %s1460_s19, 4294966784  ;;  %s33_s10 = sadd.s32 1, %s2845_s9   ;;  %s2848_s16 = sld [smem:[#allocation31_spill]] }
 0x5b3   : > { %p30_p10 = scmp.ge.s32.totalorder %s33_s10, 4   ;;  %s2849_s30 = sld [smem:[#allocation26_spill]] }
 0x5b4   : > { %s2850_s9 = sld [smem:[#allocation29_spill]]  ;;  %s2851_s27 = smov %s2215_s28 }
 0x5b5   : > { %s2852_s28 = smov %s2219_s29  ;;  %32 = sbr.rel (!%p30_p10) target bundleno = 17 (0x11), region = 153 }
 0x5b8   : > { %s2853_s29 = smov %s2848_s16 }
 0x5bc   :  { %1465 = vsyncpa [#allocation5], 1 }
 0x5bd   :  { %1467 = vsyncpa [#allocation5 + $0x1], 1 }
 0x5be   :  { %1468 = vsyncpa [#allocation8], 1 }
 0x5bf   :  { %1470 = vsyncpa [#allocation8 + $0x1], 1 }
 0x5c0   :  { %1471 = vsyncpa [#allocation11], 1 }
 0x5c1   :  { %1472 = vsyncpa [#allocation14], 1 }
 0x5c2   :  { %1473 = vsyncpa [#allocation6], 1 }
 0x5c3   :  { %1475 = vsyncpa [#allocation6 + $0x1], 1 }
 0x5c4   :  { %1476 = vsyncpa [#allocation17], 1 }
 0x5c5   :  { %1478 = vsyncpa [#allocation17 + $0x1], 1 }

</bundles_post_ra>
